<compile_context>
chip_gen: v6e
topology: v6e:2x2x1
jax: 0.10.0
libtpu: 0.0.40
codegen_flags: <defaults>
</compile_context>

<pallas_src>
import math

import jax
import jax.numpy as jnp
from jax.experimental import pallas as pl
from jax.experimental.pallas import tpu as pltpu


def _build_pe(d_model: int, max_len: int, dtype=jnp.float32) -> jnp.ndarray:
    """Sinusoidal positional-encoding buffer, shape (1, max_len, d_model)."""
    position = jnp.arange(max_len, dtype=jnp.float32)[:, None]             # (max_len, 1)
    div_term = jnp.exp(
        jnp.arange(0, d_model, 2, dtype=jnp.float32) * (-math.log(10000.0) / d_model)
    )                                                                       # (d_model//2,)
    angles = position * div_term                                            # (max_len, d_model//2)
    pe = jnp.zeros((max_len, d_model), dtype=jnp.float32)
    pe = pe.at[:, 0::2].set(jnp.sin(angles))
    pe = pe.at[:, 1::2].set(jnp.cos(angles))
    return pe[None, :, :].astype(dtype)                                     # (1, max_len, d_model)


def _add_pe_kernel(x_ref, pe_ref, o_ref):
    # (tB, tR, W) + (1, tR, W): batch-broadcast elementwise VPU add; HBM-bound.
    o_ref[...] = x_ref[...] + pe_ref[...]


_BLOCK_BUDGET = 2 * 1024 * 1024  # target bytes per x/out block (1-4 MiB sweet spot)


def _tile_plan(B: int, rows: int, row_bytes: int, sublane: int) -> tuple[int, int]:
    """Choose (tB, tR): batch rows and seq rows per block, sized by bytes."""
    total_seq_bytes = rows * row_bytes
    if total_seq_bytes <= _BLOCK_BUDGET:
        # One full-seq block per step; fold batch rows in to reach the byte budget.
        tR = rows
        tB = min(B, max(1, _BLOCK_BUDGET // max(1, total_seq_bytes)))
    else:
        tR = max(sublane, (_BLOCK_BUDGET // row_bytes) // sublane * sublane)
        tB = 1
    return tB, tR


def positional_encoding_forward(x: jnp.ndarray, pe: jnp.ndarray) -> jnp.ndarray:
    """x: (B, S, D); pe: (1, max_len, D). Returns x + pe[:, :S] in x.dtype."""
    B, S, D = x.shape
    _, max_len, D_pe = pe.shape
    if D_pe != D:
        raise ValueError(f"pe d_model {D_pe} != x d_model {D}")
    if S > max_len:
        raise ValueError(f"sequence length {S} exceeds max_len {max_len}")

    if pe.dtype != x.dtype:
        pe = pe.astype(x.dtype)  # one-time tiny cast (matches torch buffer-in-model-dtype)

    itemsize = jnp.dtype(x.dtype).itemsize
    sublane = max(8, 32 // itemsize)  # 8 f32 / 16 bf16 / 32 int8-fp8

    # Lane-dense relayout when D does not fill the 128-lane vreg: view the
    # contiguous (B, S, D) buffer as (B, S*D//128, 128) (zero-copy for x) so
    # stores are full unmasked vst; pe takes the same view of its first S rows.
    lane_dense = (D % 128 != 0) and ((S * D) % 128 == 0)
    if lane_dense:
        rows, width = (S * D) // 128, 128
        x_in = x.reshape(B, rows, width)
        pe_in = (pe if S == max_len else pe[:, :S, :]).reshape(1, rows, width)
    else:
        rows, width = S, D
        x_in, pe_in = x, pe

    row_bytes = width * itemsize
    tB, tR = _tile_plan(B, rows, row_bytes, sublane)

    # pe's seq block must be a multiple of 8 sublanes or equal pe's own seq
    # extent; only the "one full-seq block with ragged S" case needs a slice.
    if (not lane_dense) and tR == rows and rows % 8 != 0 and rows != max_len:
        pe_in = pe_in[:, :rows, :]  # tiny one-time copy (S*D elements)

    # Batch innermost: pe's block index (0, s, 0) is constant along it, so the
    # pe tile is not re-DMA'd per batch block.
    grid = (pl.cdiv(rows, tR), pl.cdiv(B, tB))

    # VMEM limit derived from actual need: x/out/pe tiles, each double-buffered.
    x_block_bytes = tB * tR * width * itemsize
    pe_block_bytes = tR * width * itemsize
    need = 2 * (2 * x_block_bytes + pe_block_bytes)
    vmem_limit = int(min(48 * 1024 * 1024, max(16 * 1024 * 1024, 2 * need + (4 << 20))))

    out = pl.pallas_call(
        _add_pe_kernel,
        out_shape=jax.ShapeDtypeStruct((B, rows, width), x.dtype),
        grid_spec=pl.GridSpec(
            grid=grid,
            in_specs=[
                pl.BlockSpec((tB, tR, width), lambda s, b: (b, s, 0)),  # x tile
                pl.BlockSpec((1, tR, width), lambda s, b: (0, s, 0)),   # pe tile (batch-shared)
            ],
            out_specs=pl.BlockSpec((tB, tR, width), lambda s, b: (b, s, 0)),
        ),
        compiler_params=pltpu.CompilerParams(
            dimension_semantics=("parallel", "parallel"),
            vmem_limit_bytes=vmem_limit,
        ),
    )(x_in, pe_in)

    return out.reshape(B, S, D) if lane_dense else out


if __name__ == "__main__":
    key = jax.random.PRNGKey(0)
    k1, k2 = jax.random.split(key)

    # Primary case (small shapes, D=32 -> exercises the lane-dense relayout path).
    d_model, max_len, batch, seq = 32, 16, 2, 8
    pe = _build_pe(d_model, max_len, dtype=jnp.float32)
    x = jax.random.normal(k1, (batch, seq, d_model), dtype=jnp.float32)
    out = jax.block_until_ready(positional_encoding_forward(x, pe))
    ref = x + pe[:, :seq]
    assert out.shape == (batch, seq, d_model)
    assert jnp.allclose(out, ref, atol=1e-6, rtol=1e-6), "mismatch vs reference (lane-dense path)"

    # Extra coverage: D multiple of 128, ragged S -> cdiv grid with a padded edge block.
    d_model2, max_len2, batch2, seq2 = 256, 4096, 2, 3000
    pe2 = _build_pe(d_model2, max_len2, dtype=jnp.float32)
    x2 = jax.random.normal(k2, (batch2, seq2, d_model2), dtype=jnp.float32)
    out2 = jax.block_until_ready(positional_encoding_forward(x2, pe2))
    ref2 = x2 + pe2[:, :seq2]
    assert out2.shape == (batch2, seq2, d_model2)
    assert jnp.allclose(out2, ref2, atol=1e-6, rtol=1e-6), "mismatch vs reference (tiled path)"

    print("KERNEL_OK")
</pallas_src>

<mosaic_0001>
module attributes {stable_mosaic.version = 11 : i64} {
  func.func @_add_pe_kernel(%arg0: i32, %arg1: i32, %arg2: memref<2x2x128xf32, #tpu.memory_space<vmem>>, %arg3: memref<1x2x128xf32, #tpu.memory_space<vmem>>, %arg4: memref<2x2x128xf32, #tpu.memory_space<vmem>>) attributes {dimension_semantics = [#tpu.dimension_semantics<parallel>, #tpu.dimension_semantics<parallel>], iteration_bounds = array<i64: 1, 1>, scalar_prefetch = 0 : i64, scratch_operands = 0 : i64, tpu.core_type = #tpu.core_type<tc>, window_params = [{transform_indices = @transform_0, window_bounds = array<i64: 2, 2, 128>}, {transform_indices = @transform_1, window_bounds = array<i64: 1, 2, 128>}, {transform_indices = @transform_2, window_bounds = array<i64: 2, 2, 128>}]} {
    %c0 = arith.constant 0 : index
    %c0_0 = arith.constant 0 : index
    %c0_1 = arith.constant 0 : index
    %0 = vector.load %arg2[%c0, %c0_0, %c0_1] : memref<2x2x128xf32, #tpu.memory_space<vmem>>, vector<2x2x128xf32>
    %c0_2 = arith.constant 0 : index
    %c0_3 = arith.constant 0 : index
    %c0_4 = arith.constant 0 : index
    %1 = vector.load %arg3[%c0_2, %c0_3, %c0_4] : memref<1x2x128xf32, #tpu.memory_space<vmem>>, vector<1x2x128xf32>
    %2 = vector.broadcast %1 : vector<1x2x128xf32> to vector<2x2x128xf32>
    %3 = arith.addf %0, %2 : vector<2x2x128xf32>
    %c0_5 = arith.constant 0 : index
    %c0_6 = arith.constant 0 : index
    %c0_7 = arith.constant 0 : index
    %4 = vector.load %arg4[%c0_5, %c0_6, %c0_7] : memref<2x2x128xf32, #tpu.memory_space<vmem>>, vector<2x2x128xf32>
    tpu.vector_store %arg4[%c0_5, %c0_6, %c0_7], %3 {strides = array<i32>} : memref<2x2x128xf32, #tpu.memory_space<vmem>>, vector<2x2x128xf32>,
    return
  }
  func.func @transform_0(%arg0: i32, %arg1: i32) -> (i32, i32, i32) {
    %c0_i32 = arith.constant 0 : i32
    %c0_i32_0 = arith.constant 0 : i32
    return %arg1, %arg0, %c0_i32 : i32, i32, i32
  }
  func.func @transform_1(%arg0: i32, %arg1: i32) -> (i32, i32, i32) {
    %c0_i32 = arith.constant 0 : i32
    %c0_i32_0 = arith.constant 0 : i32
    %c0_i32_1 = arith.constant 0 : i32
    return %c0_i32, %arg0, %c0_i32_0 : i32, i32, i32
  }
  func.func @transform_2(%arg0: i32, %arg1: i32) -> (i32, i32, i32) {
    %c0_i32 = arith.constant 0 : i32
    %c0_i32_0 = arith.constant 0 : i32
    return %arg1, %arg0, %c0_i32 : i32, i32, i32
  }
}

</mosaic_0001>

<bundles_post_ra>
// kernel: tpu_custom_call.1
= control target key start
LH: loop header
LB: loop body
LE: loop exit
PB: predicated region body
PF: predicated region fallthrough
CT: control target
= control target key end

     0   :  { %7 = vsyncpa [#allocation3], 0  ;;  %s169_s0 = inlined_call_operand.hbm [shape: f32[2,2,128], index: 0, kind: input, shape index: {}]   ;;  %s170_s1 = inlined_call_operand.hbm [shape: f32[1,2,128], index: 1, kind: input, shape index: {}]   ;;  %s171_s2 = inlined_call_operand.hbm [shape: f32[2,2,128], index: 2, kind: output, shape index: {}]  }
   0x1   :  { %8 = vsyncpa [#allocation6], 0 }
   0x2   :  { %9 = vsyncpa [#allocation4], 0  ;;  %s134_s9 = smov [#allocation2]  }
   0x3   :  { %s15_s10 = sshll.u32 %s134_s9, 4  ;;  %s16_s10 = int_to_ptr.vmem [resolvable:$true] %s15_s10 }
   0x4   :  { %s76_s11 = scalar_lea.vmem %s16_s10, 64  ;;  %p81_p1 = scmp.lt.s32.totalorder %s16_s10, %s16_s10 }
   0x5   :  { %p77_p0 = scmp.ne.s32.totalorder %s16_s10, %s76_s11  ;;  %p82_p2 = scmp.lt.s32.totalorder %s76_s11, %s76_s11 }
   0x7   :  { %p83_p3 = por %p82_p2, %p81_p1 }
   0x9   :  { %p84_p4 = pnand %p83_p3, %p77_p0 }
   0xb   :  { %87 = shalt.err (!%p84_p4)
}
   0xc   :  { %s135_s12 = smov 32   ;;  %s136_s13 = smov 2  }
   0xd   :  { %21 = dma.hbm_to_vmem [thread:$0]  %s169_s0, 64, %s16_s10, [#allocation3], %s135_s12, %s135_s12, %s136_s13  }
   0xe   :  { %s137_s16 = smov [#allocation5]  }
   0xf   :  { %s28_s17 = sshll.u32 %s137_s16, 4  ;;  %s29_s17 = int_to_ptr.vmem [resolvable:$true] %s28_s17 }
  0x10   :  { %s96_s18 = scalar_lea.vmem %s29_s17, 32  ;;  %p101_p6 = scmp.lt.s32.totalorder %s29_s17, %s29_s17 }
  0x11   :  { %p97_p5 = scmp.ne.s32.totalorder %s29_s17, %s96_s18  ;;  %p102_p7 = scmp.lt.s32.totalorder %s96_s18, %s96_s18 }
  0x13   :  { %p103_p8 = por %p102_p7, %p101_p6 }
  0x15   :  { %p104_p9 = pnand %p103_p8, %p97_p5 }
  0x17   :  { %107 = shalt.err (!%p104_p9)
}
  0x18   :  { %31 = dma.hbm_to_vmem [thread:$0]  %s170_s1, 32, %s29_s17, [#allocation6]  }
  0x19   :  { %128 = dma.done.wait [#allocation3], 64  }
  0x1a   :  { %129 = vsyncadd [#allocation3], 4294967232 }
  0x1b   :  { %130 = dma.done.wait [#allocation6], 32  }
  0x1c   :  { %131 = vsyncadd [#allocation6], 4294967264  ;;  %s138_s21 = smov [#allocation7]   ;;  %v38_v0 = vld [vmem:[#allocation2] sm:$0x3] }
  0x1d   :  { %s50_s0 = sshll.u32 %s138_s21, 4  ;;  %v40_v1 = vld [vmem:[#allocation5] sm:$0x3]  ;;  %v39_v2 = vld [vmem:[#allocation2 + $0x2] sm:$0x3]  ;;  %s51_s0 = int_to_ptr.vmem [resolvable:$true] %s50_s0 }
  0x1e   :  { %v41_v3 = vadd.f32 %v40_v1, %v38_v0  ;;  %v42_v4 = vadd.f32 %v40_v1, %v39_v2  ;;  %s108_s22 = scalar_lea.vmem %s51_s0, 64  ;;  %p113_p11 = scmp.lt.s32.totalorder %s51_s0, %s51_s0 }
  0x1f   :  { %p109_p10 = scmp.ne.s32.totalorder %s51_s0, %s108_s22  ;;  %p114_p12 = scmp.lt.s32.totalorder %s108_s22, %s108_s22 }
  0x20   :  { %43 = vst [vmem:[#allocation7] sm:$0x3] %v41_v3  ;;  %44 = vst [vmem:[#allocation7 + $0x2] sm:$0x3] %v42_v4 }
  0x21   :  { %p115_p13 = por %p114_p12, %p113_p11 }
  0x23   :  { %p116_p0 = pnand %p115_p13, %p109_p10 }
  0x25   :  { %119 = shalt.err (!%p116_p0)
}
  0x26   :  { %56 = dma.vmem_to_hbm [thread:$0]  %s51_s0, 64, %s171_s2, [#allocation4], %s135_s12, %s135_s12, %s136_s13  }
  0x27   :  { %132 = dma.done.wait [#allocation4], 64  }
  0x28   :  { %133 = vsyncadd [#allocation4], 4294967232 }
  0x29   :  { %60 = vsyncpa [#allocation3], 1 }
  0x2a   :  { %61 = vsyncpa [#allocation6], 1 }
  0x2b   :  { %62 = vsyncpa [#allocation4], 1 }

</bundles_post_ra>
